<compile_context>
chip_gen: v6e
topology: v6e:2x2x1
jax: 0.10.0
libtpu: 0.0.40
codegen_flags: <defaults>
</compile_context>

<pallas_src>
import functools

import jax
import jax.numpy as jnp
from jax.experimental import pallas as pl
from jax.experimental.pallas import tpu as pltpu

EPS = 1e-5      # PyTorch LayerNorm default eps
LANES = 128     # lane-dense internal width (L = 107 padded up to this)


# ----------------------------------------------------------------------------
# Fused kernel: conv1d(same) + GLU/ReLU + LayerNorm([G, L]) + concat([x, out]).
# Bblk batch elements per grid step; merged-lane layout (C, Bblk*128).
# ----------------------------------------------------------------------------
def _dense_block_kernel(x_ref, w_ref, b_ref, g_ref, bt_ref, o_ref, *,
                        K, pad, L, Cin, G, Bblk, glu):
    # x_ref : (Cin, N)        N = Bblk*128; lanes with (lane % 128) >= L are 0
    # w_ref : (K, Cout, Cin)  tap-major conv weights
    # b_ref : (Cout, 1)       conv bias
    # g_ref : (G, 128)        LayerNorm gamma (lane-padded with zeros)
    # bt_ref: (G, 128)        LayerNorm beta  (lane-padded with zeros)
    # o_ref : (Cin+G, N)      output = [x ; normalized new feature], lane-dense
    N = Bblk * LANES
    x = x_ref[...]                                         # (Cin, N)

    # --- conv1d(same) as K accumulated wide MXU GEMMs (N columns) -----------
    # Rolling the merged-lane buffer reproduces zero padding at both ends of
    # every 128-lane sample window because lanes [L,128) of each window are 0
    # (requires pad <= 128 - L, asserted in the wrapper).
    acc = None
    for k in range(K):
        xk = x if k == pad else pltpu.roll(x, shift=(pad - k) % N, axis=1)
        t = jnp.dot(w_ref[k], xk, preferred_element_type=jnp.float32)
        acc = t if acc is None else acc + t                # (Cout, N)
    conv = acc + b_ref[...]                                # broadcast VPU add

    # --- activation ----------------------------------------------------------
    if glu:
        feat = conv[:G, :] * jax.nn.sigmoid(conv[G:, :])   # (G, N)
    else:
        feat = jnp.maximum(conv, 0.0)                      # (G, N)

    # --- passthrough channels: one lane-dense store --------------------------
    o_ref[0:Cin, :] = x

    # --- per-sample LayerNorm over (G, L): two-pass stats, pad lanes masked --
    valid = jax.lax.broadcasted_iota(jnp.int32, (G, LANES), 1) < L
    inv_n = 1.0 / float(G * L)
    gamma = g_ref[...]
    beta = bt_ref[...]
    for s in range(Bblk):                    # static, 128-aligned lane slices
        f = feat[:, s * LANES:(s + 1) * LANES]             # (G, 128)
        fm = jnp.where(valid, f, 0.0)
        mean = jnp.sum(fm, keepdims=True) * inv_n          # (1, 1)
        d = jnp.where(valid, f - mean, 0.0)
        var = jnp.sum(d * d, keepdims=True) * inv_n
        y = (f - mean) * jax.lax.rsqrt(var + EPS) * gamma + beta
        # gamma/beta pad lanes are 0 => y pad lanes are exactly 0, so this
        # lane-dense store preserves the zero-pad invariant for chained blocks.
        o_ref[Cin:Cin + G, s * LANES:(s + 1) * LANES] = y


def dense_conv_block(x, w, b, gamma, beta, *, glu_act, bblk=4):
    """x: (B, Cin, 107); w: (Cout, Cin, K) [PyTorch Conv1d layout]; b: (Cout,);
    gamma/beta: (G, 107)  ->  (B, Cin + G, 107)."""
    B, Cin, L = x.shape
    Cout, _, K = w.shape
    G = gamma.shape[0]
    pad = (K - 1) // 2
    assert gamma.shape == (G, L) and beta.shape == (G, L)
    assert Cout == (2 * G if glu_act else G)
    assert pad <= LANES - L, "kernel_size too large for the 128-lane windows"

    # Pad batch to a multiple of Bblk, lane-pad L -> 128, and switch to the
    # channel-major merged-lane layout (Cin, Bp*128).  In a DenseNet stack this
    # layout is produced once and flows between blocks; here it is created and
    # undone at the wrapper boundary.
    Bp = pl.cdiv(B, bblk) * bblk
    xp = jnp.pad(x, ((0, Bp - B), (0, 0), (0, LANES - L)))
    x2 = jnp.transpose(xp, (1, 0, 2)).reshape(Cin, Bp * LANES)

    wt = jnp.transpose(w, (2, 0, 1))                       # (K, Cout, Cin)
    b2 = b[:, None]                                        # (Cout, 1)
    gp = jnp.pad(gamma, ((0, 0), (0, LANES - L)))          # (G, 128)
    bp = jnp.pad(beta, ((0, 0), (0, LANES - L)))           # (G, 128)

    C_total = Cin + G
    N = bblk * LANES
    kern = functools.partial(_dense_block_kernel, K=K, pad=pad, L=L,
                             Cin=Cin, G=G, Bblk=bblk, glu=glu_act)
    o2 = pl.pallas_call(
        kern,
        out_shape=jax.ShapeDtypeStruct((C_total, Bp * LANES), jnp.float32),
        grid=(Bp // bblk,),
        in_specs=[
            pl.BlockSpec((Cin, N), lambda i: (0, i)),
            # Grid-invariant operands: constant block index -> fetched once.
            pl.BlockSpec((K, Cout, Cin), lambda i: (0, 0, 0)),
            pl.BlockSpec((Cout, 1), lambda i: (0, 0)),
            pl.BlockSpec((G, LANES), lambda i: (0, 0)),
            pl.BlockSpec((G, LANES), lambda i: (0, 0)),
        ],
        out_specs=pl.BlockSpec((C_total, N), lambda i: (0, i)),
        compiler_params=pltpu.CompilerParams(
            dimension_semantics=("parallel",)),
    )(x2, wt, b2, gp, bp)

    # Back to the PyTorch layout (done once; skipped when blocks are chained).
    out = o2.reshape(C_total, Bp, LANES).transpose(1, 0, 2)
    return out[:B, :, :L]


# ----------------------------------------------------------------------------
# Pure-JAX reference (mirrors the PyTorch module) for a correctness check.
# ----------------------------------------------------------------------------
def dense_conv_block_ref(x, w, b, gamma, beta, *, glu_act):
    Cout, Cin, K = w.shape
    pad = (K - 1) // 2
    L = x.shape[2]
    xpad = jnp.pad(x, ((0, 0), (0, 0), (pad, pad)))
    out = jnp.zeros((x.shape[0], Cout, L), jnp.float32)
    for k in range(K):
        out = out + jnp.einsum("oc,bcl->bol", w[:, :, k], xpad[:, :, k:k + L])
    out = out + b[None, :, None]
    if glu_act:
        G = Cout // 2
        out = out[:, :G] * jax.nn.sigmoid(out[:, G:])
    else:
        out = jnp.maximum(out, 0.0)
    mean = jnp.mean(out, axis=(1, 2), keepdims=True)
    var = jnp.mean((out - mean) ** 2, axis=(1, 2), keepdims=True)
    out = (out - mean) * jax.lax.rsqrt(var + EPS) * gamma[None] + beta[None]
    return jnp.concatenate([x, out], axis=1)


if __name__ == "__main__":
    L = 107              # fixed by LayerNorm([growth_rate, 107]) in the module
    B = 8                # small demo batch; Bblk=4 -> 2 grid steps (both TCs)
    n_inp_features = 12
    growth_rate = 8

    key = jax.random.PRNGKey(0)

    for glu_act, kernel_size in ((True, 3), (False, 5)):
        out_ch = growth_rate * 2 if glu_act else growth_rate
        k1, k2, k3, k4, k5, key = jax.random.split(key, 6)
        w = 0.1 * jax.random.normal(
            k1, (out_ch, n_inp_features, kernel_size), jnp.float32)
        b = 0.1 * jax.random.normal(k2, (out_ch,), jnp.float32)
        gamma = 1.0 + 0.05 * jax.random.normal(
            k3, (growth_rate, L), jnp.float32)
        beta = 0.05 * jax.random.normal(k4, (growth_rate, L), jnp.float32)
        x = jax.random.normal(k5, (B, n_inp_features, L), jnp.float32)

        out = jax.block_until_ready(
            dense_conv_block(x, w, b, gamma, beta, glu_act=glu_act, bblk=4))
        assert out.shape == (B, n_inp_features + growth_rate, L), out.shape

        ref = jax.block_until_ready(
            dense_conv_block_ref(x, w, b, gamma, beta, glu_act=glu_act))
        err = float(jnp.max(jnp.abs(out - ref)))
        assert jnp.allclose(out, ref, atol=2e-3, rtol=2e-3), err

    print("KERNEL_OK")
</pallas_src>

<mosaic_0001>
module attributes {stable_mosaic.version = 11 : i64} {
  func.func @_dense_block_kernel(%arg0: i32, %arg1: memref<12x512xf32, #tpu.memory_space<vmem>>, %arg2: memref<3x16x12xf32, #tpu.memory_space<vmem>>, %arg3: memref<16x1xf32, #tpu.memory_space<vmem>>, %arg4: memref<8x128xf32, #tpu.memory_space<vmem>>, %arg5: memref<8x128xf32, #tpu.memory_space<vmem>>, %arg6: memref<20x512xf32, #tpu.memory_space<vmem>>) attributes {dimension_semantics = [#tpu.dimension_semantics<parallel>], iteration_bounds = array<i64: 2>, scalar_prefetch = 0 : i64, scratch_operands = 0 : i64, tpu.core_type = #tpu.core_type<tc>, window_params = [{transform_indices = @transform_0, window_bounds = array<i64: 12, 512>}, {pipeline_mode = #tpu.pipeline_mode<synchronous>, transform_indices = @transform_1, window_bounds = array<i64: 3, 16, 12>}, {pipeline_mode = #tpu.pipeline_mode<synchronous>, transform_indices = @transform_2, window_bounds = array<i64: 16, 1>}, {pipeline_mode = #tpu.pipeline_mode<synchronous>, transform_indices = @transform_3, window_bounds = array<i64: 8, 128>}, {pipeline_mode = #tpu.pipeline_mode<synchronous>, transform_indices = @transform_4, window_bounds = array<i64: 8, 128>}, {transform_indices = @transform_5, window_bounds = array<i64: 20, 512>}]} {
    %c0 = arith.constant 0 : index
    %c0_0 = arith.constant 0 : index
    %0 = vector.load %arg1[%c0, %c0_0] : memref<12x512xf32, #tpu.memory_space<vmem>>, vector<12x512xf32>
    %c1_i32 = arith.constant 1 : i32
    %1 = tpu.dynamic_rotate %0 by %c1_i32 dim 1 : vector<12x512xf32>, i32 -> vector<12x512xf32>
    %c0_1 = arith.constant 0 : index
    %c0_2 = arith.constant 0 : index
    %c0_3 = arith.constant 0 : index
    %2 = vector.load %arg2[%c0_1, %c0_2, %c0_3] : memref<3x16x12xf32, #tpu.memory_space<vmem>>, vector<1x16x12xf32>
    %3 = vector.shape_cast %2 : vector<1x16x12xf32> to vector<16x12xf32>
    %cst = arith.constant dense<0.000000e+00> : vector<16x512xf32>
    %4 = tpu.matmul %3, %1, %cst {dimension_numbers = #tpu.dot_dimension_numbers<[1], [0], [0], [1], [0, 0, 1, 1], [], []>} : vector<16x12xf32>, vector<12x512xf32>, vector<16x512xf32> -> vector<16x512xf32>
    %c1 = arith.constant 1 : index
    %c0_4 = arith.constant 0 : index
    %c0_5 = arith.constant 0 : index
    %5 = vector.load %arg2[%c1, %c0_4, %c0_5] : memref<3x16x12xf32, #tpu.memory_space<vmem>>, vector<1x16x12xf32>
    %6 = vector.shape_cast %5 : vector<1x16x12xf32> to vector<16x12xf32>
    %cst_6 = arith.constant dense<0.000000e+00> : vector<16x512xf32>
    %7 = tpu.matmul %6, %0, %cst_6 {dimension_numbers = #tpu.dot_dimension_numbers<[1], [0], [0], [1], [0, 0, 1, 1], [], []>} : vector<16x12xf32>, vector<12x512xf32>, vector<16x512xf32> -> vector<16x512xf32>
    %8 = arith.addf %4, %7 : vector<16x512xf32>
    %c511_i32 = arith.constant 511 : i32
    %9 = tpu.dynamic_rotate %0 by %c511_i32 dim 1 : vector<12x512xf32>, i32 -> vector<12x512xf32>
    %c2 = arith.constant 2 : index
    %c0_7 = arith.constant 0 : index
    %c0_8 = arith.constant 0 : index
    %10 = vector.load %arg2[%c2, %c0_7, %c0_8] : memref<3x16x12xf32, #tpu.memory_space<vmem>>, vector<1x16x12xf32>
    %11 = vector.shape_cast %10 : vector<1x16x12xf32> to vector<16x12xf32>
    %cst_9 = arith.constant dense<0.000000e+00> : vector<16x512xf32>
    %12 = tpu.matmul %11, %9, %cst_9 {dimension_numbers = #tpu.dot_dimension_numbers<[1], [0], [0], [1], [0, 0, 1, 1], [], []>} : vector<16x12xf32>, vector<12x512xf32>, vector<16x512xf32> -> vector<16x512xf32>
    %13 = arith.addf %8, %12 : vector<16x512xf32>
    %c0_10 = arith.constant 0 : index
    %c0_11 = arith.constant 0 : index
    %14 = vector.load %arg3[%c0_10, %c0_11] : memref<16x1xf32, #tpu.memory_space<vmem>>, vector<16x1xf32>
    %15 = vector.broadcast %14 : vector<16x1xf32> to vector<16x512xf32>
    %16 = arith.addf %13, %15 : vector<16x512xf32>
    %17 = vector.extract_strided_slice %16 {offsets = [0, 0], sizes = [8, 512], strides = [1, 1]} : vector<16x512xf32> to vector<8x512xf32>
    %18 = vector.extract_strided_slice %16 {offsets = [8, 0], sizes = [8, 512], strides = [1, 1]} : vector<16x512xf32> to vector<8x512xf32>
    %19 = arith.negf %18 : vector<8x512xf32>
    %20 = math.exp %19 : vector<8x512xf32>
    %cst_12 = arith.constant 1.000000e+00 : f32
    %21 = vector.broadcast %cst_12 : f32 to vector<8x512xf32>
    %22 = arith.addf %21, %20 : vector<8x512xf32>
    %23 = arith.divf %21, %22 : vector<8x512xf32>
    %24 = arith.mulf %17, %23 : vector<8x512xf32>
    %c0_13 = arith.constant 0 : index
    %c0_14 = arith.constant 0 : index
    %25 = vector.load %arg6[%c0_13, %c0_14] : memref<20x512xf32, #tpu.memory_space<vmem>>, vector<12x512xf32>
    tpu.vector_store %arg6[%c0_13, %c0_14], %0 {strides = array<i32>} : memref<20x512xf32, #tpu.memory_space<vmem>>, vector<12x512xf32>,
    %26 = tpu.iota {dimensions = array<i32: 1>} : vector<8x128xi32>
    %c107_i32 = arith.constant 107 : i32
    %27 = vector.broadcast %c107_i32 : i32 to vector<8x128xi32>
    %28 = arith.cmpi slt, %26, %27 : vector<8x128xi32>
    %c0_15 = arith.constant 0 : index
    %c0_16 = arith.constant 0 : index
    %29 = vector.load %arg4[%c0_15, %c0_16] : memref<8x128xf32, #tpu.memory_space<vmem>>, vector<8x128xf32>
    %c0_17 = arith.constant 0 : index
    %c0_18 = arith.constant 0 : index
    %30 = vector.load %arg5[%c0_17, %c0_18] : memref<8x128xf32, #tpu.memory_space<vmem>>, vector<8x128xf32>
    %31 = vector.extract_strided_slice %24 {offsets = [0, 0], sizes = [8, 128], strides = [1, 1]} : vector<8x512xf32> to vector<8x128xf32>
    %cst_19 = arith.constant 0.000000e+00 : f32
    %32 = vector.broadcast %cst_19 : f32 to vector<8x128xf32>
    %33 = arith.select %28, %31, %32 : vector<8x128xi1>, vector<8x128xf32>
    %34 = vector.shape_cast %33 : vector<8x128xf32> to vector<1x8x128xf32>
    %cst_20 = arith.constant dense<0.000000e+00> : vector<1xf32>
    %35 = vector.multi_reduction <add>, %34, %cst_20 [1, 2] : vector<1x8x128xf32> to vector<1xf32>
    %36 = vector.shape_cast %35 : vector<1xf32> to vector<1x1x1xf32>
    %37 = vector.extract %36[0, 0, 0] : f32 from vector<1x1x1xf32>
    %38 = vector.broadcast %37 : f32 to vector<1x1xf32>
    %cst_21 = arith.constant 0.00116822426 : f32
    %39 = vector.broadcast %cst_21 : f32 to vector<1x1xf32>
    %40 = arith.mulf %38, %39 : vector<1x1xf32>
    %41 = vector.broadcast %40 : vector<1x1xf32> to vector<8x128xf32>
    %42 = arith.subf %31, %41 : vector<8x128xf32>
    %cst_22 = arith.constant 0.000000e+00 : f32
    %43 = vector.broadcast %cst_22 : f32 to vector<8x128xf32>
    %44 = arith.select %28, %42, %43 : vector<8x128xi1>, vector<8x128xf32>
    %45 = arith.mulf %44, %44 : vector<8x128xf32>
    %46 = vector.shape_cast %45 : vector<8x128xf32> to vector<1x8x128xf32>
    %cst_23 = arith.constant dense<0.000000e+00> : vector<1xf32>
    %47 = vector.multi_reduction <add>, %46, %cst_23 [1, 2] : vector<1x8x128xf32> to vector<1xf32>
    %48 = vector.shape_cast %47 : vector<1xf32> to vector<1x1x1xf32>
    %49 = vector.extract %48[0, 0, 0] : f32 from vector<1x1x1xf32>
    %50 = vector.broadcast %49 : f32 to vector<1x1xf32>
    %cst_24 = arith.constant 0.00116822426 : f32
    %51 = vector.broadcast %cst_24 : f32 to vector<1x1xf32>
    %52 = arith.mulf %50, %51 : vector<1x1xf32>
    %53 = vector.broadcast %40 : vector<1x1xf32> to vector<8x128xf32>
    %54 = arith.subf %31, %53 : vector<8x128xf32>
    %cst_25 = arith.constant 9.99999974E-6 : f32
    %55 = vector.broadcast %cst_25 : f32 to vector<1x1xf32>
    %56 = arith.addf %52, %55 : vector<1x1xf32>
    %57 = math.rsqrt %56 : vector<1x1xf32>
    %58 = vector.broadcast %57 : vector<1x1xf32> to vector<8x128xf32>
    %59 = arith.mulf %54, %58 : vector<8x128xf32>
    %60 = arith.mulf %59, %29 : vector<8x128xf32>
    %61 = arith.addf %60, %30 : vector<8x128xf32>
    %c12 = arith.constant 12 : index
    %c0_26 = arith.constant 0 : index
    %62 = vector.load %arg6[%c12, %c0_26] : memref<20x512xf32, #tpu.memory_space<vmem>>, vector<8x128xf32>
    tpu.vector_store %arg6[%c12, %c0_26], %61 {strides = array<i32>} : memref<20x512xf32, #tpu.memory_space<vmem>>, vector<8x128xf32>,
    %63 = vector.extract_strided_slice %24 {offsets = [0, 128], sizes = [8, 128], strides = [1, 1]} : vector<8x512xf32> to vector<8x128xf32>
    %cst_27 = arith.constant 0.000000e+00 : f32
    %64 = vector.broadcast %cst_27 : f32 to vector<8x128xf32>
    %65 = arith.select %28, %63, %64 : vector<8x128xi1>, vector<8x128xf32>
    %66 = vector.shape_cast %65 : vector<8x128xf32> to vector<1x8x128xf32>
    %cst_28 = arith.constant dense<0.000000e+00> : vector<1xf32>
    %67 = vector.multi_reduction <add>, %66, %cst_28 [1, 2] : vector<1x8x128xf32> to vector<1xf32>
    %68 = vector.shape_cast %67 : vector<1xf32> to vector<1x1x1xf32>
    %69 = vector.extract %68[0, 0, 0] : f32 from vector<1x1x1xf32>
    %70 = vector.broadcast %69 : f32 to vector<1x1xf32>
    %cst_29 = arith.constant 0.00116822426 : f32
    %71 = vector.broadcast %cst_29 : f32 to vector<1x1xf32>
    %72 = arith.mulf %70, %71 : vector<1x1xf32>
    %73 = vector.broadcast %72 : vector<1x1xf32> to vector<8x128xf32>
    %74 = arith.subf %63, %73 : vector<8x128xf32>
    %cst_30 = arith.constant 0.000000e+00 : f32
    %75 = vector.broadcast %cst_30 : f32 to vector<8x128xf32>
    %76 = arith.select %28, %74, %75 : vector<8x128xi1>, vector<8x128xf32>
    %77 = arith.mulf %76, %76 : vector<8x128xf32>
    %78 = vector.shape_cast %77 : vector<8x128xf32> to vector<1x8x128xf32>
    %cst_31 = arith.constant dense<0.000000e+00> : vector<1xf32>
    %79 = vector.multi_reduction <add>, %78, %cst_31 [1, 2] : vector<1x8x128xf32> to vector<1xf32>
    %80 = vector.shape_cast %79 : vector<1xf32> to vector<1x1x1xf32>
    %81 = vector.extract %80[0, 0, 0] : f32 from vector<1x1x1xf32>
    %82 = vector.broadcast %81 : f32 to vector<1x1xf32>
    %cst_32 = arith.constant 0.00116822426 : f32
    %83 = vector.broadcast %cst_32 : f32 to vector<1x1xf32>
    %84 = arith.mulf %82, %83 : vector<1x1xf32>
    %85 = vector.broadcast %72 : vector<1x1xf32> to vector<8x128xf32>
    %86 = arith.subf %63, %85 : vector<8x128xf32>
    %cst_33 = arith.constant 9.99999974E-6 : f32
    %87 = vector.broadcast %cst_33 : f32 to vector<1x1xf32>
    %88 = arith.addf %84, %87 : vector<1x1xf32>
    %89 = math.rsqrt %88 : vector<1x1xf32>
    %90 = vector.broadcast %89 : vector<1x1xf32> to vector<8x128xf32>
    %91 = arith.mulf %86, %90 : vector<8x128xf32>
    %92 = arith.mulf %91, %29 : vector<8x128xf32>
    %93 = arith.addf %92, %30 : vector<8x128xf32>
    %c12_34 = arith.constant 12 : index
    %c128 = arith.constant 128 : index
    %94 = vector.load %arg6[%c12_34, %c128] : memref<20x512xf32, #tpu.memory_space<vmem>>, vector<8x128xf32>
    tpu.vector_store %arg6[%c12_34, %c128], %93 {strides = array<i32>} : memref<20x512xf32, #tpu.memory_space<vmem>>, vector<8x128xf32>,
    %95 = vector.extract_strided_slice %24 {offsets = [0, 256], sizes = [8, 128], strides = [1, 1]} : vector<8x512xf32> to vector<8x128xf32>
    %cst_35 = arith.constant 0.000000e+00 : f32
    %96 = vector.broadcast %cst_35 : f32 to vector<8x128xf32>
    %97 = arith.select %28, %95, %96 : vector<8x128xi1>, vector<8x128xf32>
    %98 = vector.shape_cast %97 : vector<8x128xf32> to vector<1x8x128xf32>
    %cst_36 = arith.constant dense<0.000000e+00> : vector<1xf32>
    %99 = vector.multi_reduction <add>, %98, %cst_36 [1, 2] : vector<1x8x128xf32> to vector<1xf32>
    %100 = vector.shape_cast %99 : vector<1xf32> to vector<1x1x1xf32>
    %101 = vector.extract %100[0, 0, 0] : f32 from vector<1x1x1xf32>
    %102 = vector.broadcast %101 : f32 to vector<1x1xf32>
    %cst_37 = arith.constant 0.00116822426 : f32
    %103 = vector.broadcast %cst_37 : f32 to vector<1x1xf32>
    %104 = arith.mulf %102, %103 : vector<1x1xf32>
    %105 = vector.broadcast %104 : vector<1x1xf32> to vector<8x128xf32>
    %106 = arith.subf %95, %105 : vector<8x128xf32>
    %cst_38 = arith.constant 0.000000e+00 : f32
    %107 = vector.broadcast %cst_38 : f32 to vector<8x128xf32>
    %108 = arith.select %28, %106, %107 : vector<8x128xi1>, vector<8x128xf32>
    %109 = arith.mulf %108, %108 : vector<8x128xf32>
    %110 = vector.shape_cast %109 : vector<8x128xf32> to vector<1x8x128xf32>
    %cst_39 = arith.constant dense<0.000000e+00> : vector<1xf32>
    %111 = vector.multi_reduction <add>, %110, %cst_39 [1, 2] : vector<1x8x128xf32> to vector<1xf32>
    %112 = vector.shape_cast %111 : vector<1xf32> to vector<1x1x1xf32>
    %113 = vector.extract %112[0, 0, 0] : f32 from vector<1x1x1xf32>
    %114 = vector.broadcast %113 : f32 to vector<1x1xf32>
    %cst_40 = arith.constant 0.00116822426 : f32
    %115 = vector.broadcast %cst_40 : f32 to vector<1x1xf32>
    %116 = arith.mulf %114, %115 : vector<1x1xf32>
    %117 = vector.broadcast %104 : vector<1x1xf32> to vector<8x128xf32>
    %118 = arith.subf %95, %117 : vector<8x128xf32>
    %cst_41 = arith.constant 9.99999974E-6 : f32
    %119 = vector.broadcast %cst_41 : f32 to vector<1x1xf32>
    %120 = arith.addf %116, %119 : vector<1x1xf32>
    %121 = math.rsqrt %120 : vector<1x1xf32>
    %122 = vector.broadcast %121 : vector<1x1xf32> to vector<8x128xf32>
    %123 = arith.mulf %118, %122 : vector<8x128xf32>
    %124 = arith.mulf %123, %29 : vector<8x128xf32>
    %125 = arith.addf %124, %30 : vector<8x128xf32>
    %c12_42 = arith.constant 12 : index
    %c256 = arith.constant 256 : index
    %126 = vector.load %arg6[%c12_42, %c256] : memref<20x512xf32, #tpu.memory_space<vmem>>, vector<8x128xf32>
    tpu.vector_store %arg6[%c12_42, %c256], %125 {strides = array<i32>} : memref<20x512xf32, #tpu.memory_space<vmem>>, vector<8x128xf32>,
    %127 = vector.extract_strided_slice %24 {offsets = [0, 384], sizes = [8, 128], strides = [1, 1]} : vector<8x512xf32> to vector<8x128xf32>
    %cst_43 = arith.constant 0.000000e+00 : f32
    %128 = vector.broadcast %cst_43 : f32 to vector<8x128xf32>
    %129 = arith.select %28, %127, %128 : vector<8x128xi1>, vector<8x128xf32>
    %130 = vector.shape_cast %129 : vector<8x128xf32> to vector<1x8x128xf32>
    %cst_44 = arith.constant dense<0.000000e+00> : vector<1xf32>
    %131 = vector.multi_reduction <add>, %130, %cst_44 [1, 2] : vector<1x8x128xf32> to vector<1xf32>
    %132 = vector.shape_cast %131 : vector<1xf32> to vector<1x1x1xf32>
    %133 = vector.extract %132[0, 0, 0] : f32 from vector<1x1x1xf32>
    %134 = vector.broadcast %133 : f32 to vector<1x1xf32>
    %cst_45 = arith.constant 0.00116822426 : f32
    %135 = vector.broadcast %cst_45 : f32 to vector<1x1xf32>
    %136 = arith.mulf %134, %135 : vector<1x1xf32>
    %137 = vector.broadcast %136 : vector<1x1xf32> to vector<8x128xf32>
    %138 = arith.subf %127, %137 : vector<8x128xf32>
    %cst_46 = arith.constant 0.000000e+00 : f32
    %139 = vector.broadcast %cst_46 : f32 to vector<8x128xf32>
    %140 = arith.select %28, %138, %139 : vector<8x128xi1>, vector<8x128xf32>
    %141 = arith.mulf %140, %140 : vector<8x128xf32>
    %142 = vector.shape_cast %141 : vector<8x128xf32> to vector<1x8x128xf32>
    %cst_47 = arith.constant dense<0.000000e+00> : vector<1xf32>
    %143 = vector.multi_reduction <add>, %142, %cst_47 [1, 2] : vector<1x8x128xf32> to vector<1xf32>
    %144 = vector.shape_cast %143 : vector<1xf32> to vector<1x1x1xf32>
    %145 = vector.extract %144[0, 0, 0] : f32 from vector<1x1x1xf32>
    %146 = vector.broadcast %145 : f32 to vector<1x1xf32>
    %cst_48 = arith.constant 0.00116822426 : f32
    %147 = vector.broadcast %cst_48 : f32 to vector<1x1xf32>
    %148 = arith.mulf %146, %147 : vector<1x1xf32>
    %149 = vector.broadcast %136 : vector<1x1xf32> to vector<8x128xf32>
    %150 = arith.subf %127, %149 : vector<8x128xf32>
    %cst_49 = arith.constant 9.99999974E-6 : f32
    %151 = vector.broadcast %cst_49 : f32 to vector<1x1xf32>
    %152 = arith.addf %148, %151 : vector<1x1xf32>
    %153 = math.rsqrt %152 : vector<1x1xf32>
    %154 = vector.broadcast %153 : vector<1x1xf32> to vector<8x128xf32>
    %155 = arith.mulf %150, %154 : vector<8x128xf32>
    %156 = arith.mulf %155, %29 : vector<8x128xf32>
    %157 = arith.addf %156, %30 : vector<8x128xf32>
    %c12_50 = arith.constant 12 : index
    %c384 = arith.constant 384 : index
    %158 = vector.load %arg6[%c12_50, %c384] : memref<20x512xf32, #tpu.memory_space<vmem>>, vector<8x128xf32>
    tpu.vector_store %arg6[%c12_50, %c384], %157 {strides = array<i32>} : memref<20x512xf32, #tpu.memory_space<vmem>>, vector<8x128xf32>,
    return
  }
  func.func @transform_0(%arg0: i32) -> (i32, i32) {
    %c0_i32 = arith.constant 0 : i32
    %c0_i32_0 = arith.constant 0 : i32
    return %c0_i32, %arg0 : i32, i32
  }
  func.func @transform_1(%arg0: i32) -> (i32, i32, i32) {
    %c0_i32 = arith.constant 0 : i32
    %c0_i32_0 = arith.constant 0 : i32
    %c0_i32_1 = arith.constant 0 : i32
    %c0_i32_2 = arith.constant 0 : i32
    return %c0_i32, %c0_i32_0, %c0_i32_1 : i32, i32, i32
  }
  func.func @transform_2(%arg0: i32) -> (i32, i32) {
    %c0_i32 = arith.constant 0 : i32
    %c0_i32_0 = arith.constant 0 : i32
    %c0_i32_1 = arith.constant 0 : i32
    return %c0_i32, %c0_i32_0 : i32, i32
  }
  func.func @transform_3(%arg0: i32) -> (i32, i32) {
    %c0_i32 = arith.constant 0 : i32
    %c0_i32_0 = arith.constant 0 : i32
    %c0_i32_1 = arith.constant 0 : i32
    return %c0_i32, %c0_i32_0 : i32, i32
  }
  func.func @transform_4(%arg0: i32) -> (i32, i32) {
    %c0_i32 = arith.constant 0 : i32
    %c0_i32_0 = arith.constant 0 : i32
    %c0_i32_1 = arith.constant 0 : i32
    return %c0_i32, %c0_i32_0 : i32, i32
  }
  func.func @transform_5(%arg0: i32) -> (i32, i32) {
    %c0_i32 = arith.constant 0 : i32
    %c0_i32_0 = arith.constant 0 : i32
    return %c0_i32, %arg0 : i32, i32
  }
}

</mosaic_0001>

<bundles_post_ra>
// kernel: tpu_custom_call.1
= control target key start
LH: loop header
LB: loop body
LE: loop exit
PB: predicated region body
PF: predicated region fallthrough
CT: control target
= control target key end

     0   :  { %10 = vsyncpa [#allocation3], 0  ;;  %s1823_s0 = inlined_call_operand.hbm [shape: f32[12,1024], index: 0, kind: input, shape index: {}]   ;;  %s1824_s1 = inlined_call_operand.hbm [shape: f32[3,16,12], index: 1, kind: input, shape index: {}]   ;;  %s1825_s2 = inlined_call_operand.vmem [shape: f32[16,1], index: 2, kind: input, shape index: {}]   ;;  %s1826_s3 = inlined_call_operand.vmem [shape: f32[8,128], index: 3, kind: input, shape index: {}]   ;;  %s1827_s4 = inlined_call_operand.vmem [shape: f32[8,128], index: 4, kind: input, shape index: {}]   ;;  %s1828_s5 = inlined_call_operand.hbm [shape: f32[20,1024], index: 5, kind: output, shape index: {}]  }
   0x1   :  { %12 = vsyncpa [#allocation3 + $0x1], 0 }
   0x2   :  { %13 = vsyncpa [#allocation6], 0 }
   0x3   :  { %14 = vsyncpa [#allocation4], 0 }
   0x4   :  { %16 = vsyncpa [#allocation4 + $0x1], 0  ;;  %s1479_s18 = smov 0   ;;  %s1481_s19 = smov 0  }
   0x5   :  { %s1483_s20 = smov 0   ;;  %s1485_s21 = smov 0  }
   0x6 LB: > { %s1500_s22 = sadd.s32 4294967295, %s1432_s21   ;;  %s1154_s23 = sadd.s32 4294967294, %s1432_s21   ;;  %s1432_s21 = sphi %s1485_s21, %s1850_s21   ;;  %s1428_s20 = sphi %s1483_s20, %s1849_s20   ;;  %s1424_s19 = sphi %s1481_s19, %s1848_s19   ;;  %s1420_s18 = sphi %s1479_s18, %s1847_s18  }
   0x7   : > { %s1504_s24 = sadd.s32 1, %s1432_s21   ;;  %s29_s25 = sadd.s32 1, %s1428_s20 }
   0x8   : > { %s26_s26 = ssub.s32 %s1432_s21, %s1504_s24  ;;  %p36_p0 = scmp.ne.s32.totalorder %s1428_s20, %s1424_s19 }
   0x9   : > { %p27_p1 = scmp.eq.s32.totalorder %s26_s26, 0  ;;  %p37_p2 = scmp.eq.s32.totalorder %s1432_s21, 0 }
   0xa   : > { %p42_p3 = scmp.ne.s32.totalorder %s1424_s19, %s1420_s18  ;;  %p1832_p4 = scmp.eq.s32.totalorder %s1500_s22, 0 }
   0xb   : > { %s1516_s27 = scalar_select %p27_p1, %s1428_s20, %s29_s25  }
   0xc   : > { %p1518_p5 = por %p37_p2, %p36_p0  ;;  %p1524_p6 = por %p1832_p4, %p42_p3 }
   0xd   : > { %p150_p7 = scmp.eq.s32.totalorder %s1500_s22, 1  ;;  %p156_p8 = scmp.eq.s32.totalorder %s1154_s23, 1 }
   0xe   : > { %s1834_s29 = scalar_select %p1524_p6, 1, 0 }
   0xf   : > { %p1155_p9 = scmp.ge.s32.totalorder %s1432_s21, 1  ;;  %p163_p10 = scmp.lt.s32.totalorder %s1432_s21, 3 }
  0x10   : > { %p1531_p11 = por %p150_p7, %p36_p0  ;;  %p1535_p12 = por %p156_p8, %p42_p3 }
  0x11   : > { %p1539_p13 = pnand %p1155_p9, %p163_p10  ;;  %s1434_s8 = smov [#allocation5]  }
  0x12   : > { %s1835_s30 = scalar_select %p1531_p11, 1, 0 }
  0x13   : > { %s1836_s6 = scalar_select %p1535_p12, 1, 0 }
  0x14   : > { %s1837_s7 = scalar_select %p1539_p13, 1, 0 }
  0x15   : > { %p1223_p1 = pneg %p1539_p13  ;;  %s175_s9 = sshll.u32 %s1434_s8, 4  ;;  %s176_s9 = int_to_ptr.vmem [resolvable:$true] %s175_s9 }
  0x16   : > { %p1236_p3 = scmp.lt.s32.totalorder %s1432_s21, 2  ;;  %s198_s11 = sand.u32 1, %s1428_s20  }
  0x17   : > { %p1547_p2 = pnand %p1223_p1, %p1832_p4  ;;  %s1321_s12 = scalar_lea.vmem %s176_s9, 768 }
  0x18   : > { %p1322_p8 = scmp.ne.s32.totalorder %s176_s9, %s1321_s12  ;;  %p1329_p12 = scmp.lt.s32.totalorder %s176_s9, %s176_s9 }
  0x19   : > { %p1312_p7 = pneg %p1547_p2  ;;  %p1330_p11 = scmp.lt.s32.totalorder %s1321_s12, %s1321_s12 }
  0x1b   : > { %p1324_p9 = pnand %p1322_p8, %p1312_p7  ;;  %p1331_p6 = por %p1330_p11, %p1329_p12 }
  0x1d   : > { %p1325_p10 = pneg %p1324_p9 }
  0x1f   : > { %p1332_p13 = pnand %p1331_p6, %p1325_p10 }
  0x21   : > { %1335 = shalt.err (!%p1332_p13)
}
  0x22   : > { %s1435_s13 = smov 128   ;;  %s1436_s14 = smov 8  }
  0x23   : > { %1226 = dma.hbm_to_vmem [thread:$0]  (!%p1547_p2), %s1824_s1, 768, %s176_s9, [#allocation6], %s1435_s13, %s1435_s13, %s1436_s14  }
  0x24   : > { %p1565_p1 = pnand %p1236_p3, %p1518_p5  ;;  %s1158_s23 = sshll.u32 %s198_s11, 6 }
  0x25   : > { %s1196_s25 = sshll.u32 %s1432_s21, 9  ;;  %s202_s10 = scalar_lea.vmem [#allocation2], %s1158_s23 }
  0x26   : > { %s1573_s12 = scalar_lea.hbm %s1823_s0, %s1196_s25  ;;  %s209_s15 = sshll.u32 %s202_s10, 4  ;;  %s1575_s15 = int_to_ptr.vmem [resolvable:$true] %s209_s15 }
  0x27   : > { %s1577_s28 = scalar_lea.sflag [#allocation3], %s198_s11  ;;  %s1336_s9 = scalar_lea.hbm %s1573_s12, 1024 }
  0x28   : > { %p1337_p5 = scmp.ne.s32.totalorder %s1573_s12, %s1336_s9  ;;  %p1338_p6 = pneg %p1565_p1 }
  0x29   : > { %s1341_s16 = scalar_lea.hbm %s1823_s0, 2048  ;;  %p1342_p13 = scmp.lt.s32.totalorder %s1573_s12, %s1823_s0 }
  0x2a   : > { %p1339_p11 = pnand %p1338_p6, %p1337_p5  ;;  %p1343_p2 = scmp.lt.s32.totalorder %s1341_s16, %s1336_s9 }
  0x2c   : > { %p1340_p12 = pneg %p1339_p11  ;;  %p1344_p3 = por %p1343_p2, %p1342_p13 }
  0x2e   : > { %p1345_p7 = pnand %p1344_p3, %p1340_p12 }
  0x30   : > { %1348 = shalt.err (!%p1345_p7)
}
  0x31   : > { %s1349_s11 = scalar_lea.vmem %s1575_s15, 1024  ;;  %s1437_s23 = smov [#allocation2]  }
  0x32   : > { %p1350_p8 = scmp.ne.s32.totalorder %s1575_s15, %s1349_s11  ;;  %s1354_s8 = sshll.u32 %s1437_s23, 4  ;;  %s1355_s8 = int_to_ptr.vmem [resolvable:$false] %s1354_s8 }
  0x33   : > { %s1356_s10 = scalar_lea.vmem %s1355_s8, 2048  ;;  %p1357_p5 = scmp.lt.s32.totalorder %s1575_s15, %s1355_s8 }
  0x34   : > { %p1352_p9 = pnand %p1350_p8, %p1338_p6  ;;  %p1358_p11 = scmp.lt.s32.totalorder %s1356_s10, %s1349_s11 }
  0x36   : > { %p1353_p10 = pneg %p1352_p9  ;;  %p1359_p0 = por %p1358_p11, %p1357_p5 }
  0x38   : > { %p1360_p4 = pnand %p1359_p0, %p1353_p10 }
  0x3a   : > { %1363 = shalt.err (!%p1360_p4)
}
  0x3b   : > { %s1438_s9 = smov 1024   ;;  %s1439_s13 = smov 512  }
  0x3c   : > { %s1440_s14 = smov 32   ;;  %p1840_p6 = scmp.ne.s32.totalorder %s1837_s7, 0 }
  0x3d   : > { %1230 = dma.hbm_to_vmem [thread:$0]  (!%p1565_p1), %s1573_s12, 1024, %s1575_s15, %s1577_s28, %s1438_s9, %s1439_s13, %s1440_s14  }
  0x3e   : > { %221 = sbr.rel (%p1840_p6) target bundleno = 1528 (0x5f8), region = 40  ;;  %s1601_s16 = sand.u32 (!%p1840_p6), 1, %s1424_s19  }
  0x3f   : > { %s1162_s25 = sshll.u32 (!%p1840_p6), %s1601_s16, 6  ;;  %s224_s26 = scalar_lea.sflag (!%p1840_p6), [#allocation3], %s1601_s16 }
  0x40   : > { %s227_s11 = scalar_lea.vmem (!%p1840_p6), [#allocation2], %s1162_s25  ;;  %p1841_p4 = scmp.ne.s32.totalorder (!%p1840_p6), %s1834_s29, 0 }
  0x43   : > { %1407 = dma.done.wait (%p1841_p4), %s224_s26, 1024  }
  0x44   : > { %1409 = vsyncadd (%p1841_p4), %s224_s26, 4294966272  ;;  %p1842_p0 = scmp.eq.s32.totalorder %s1500_s22, 0 }
  0x46   : > { %1411 = dma.done.wait (%p1842_p0), [#allocation6], 768   ;;  %p1843_p1 = pmov %p1842_p0 }
  0x47   : > { %v1441_v0 = vmov 0   ;;  %s1198_s7 = smul.u32 96, %s1601_s16  ;;  %v1442_v1 = vmov 0.0   ;;  %vm307_vm0 = vcmask 1043456   ;;  %v267_v2 = vld [vmem:[%s227_s11 + $0x38] sm:$0xf]  ;;  %v284_v14 = vlaneseq }
  0x48   : > { %1413 = vsyncadd (%p1843_p1), [#allocation6], 4294966528  ;;  %1285 = vset.pattern.permute.xlu1 %v1441_v0  ;;  %1284 = vset.pattern.permute.xlu0 %v1441_v0  ;;  %v264_v3 = vld [vmem:[%s227_s11 + $0x20] sm:$0xf]  ;;  %v265_v4 = vld [vmem:[%s227_s11 + $0x28] sm:$0xf] }
  0x49   : > { %384 = vmatprep.mubr.f32.mxu0 %v1442_v1  ;;  %461 = vmatprep.mubr.f32.mxu1 %v1442_v1  ;;  %s1443_s29 = smov 1   ;;  %s1617_s17 = scalar_lea.vmem [#allocation7], %s1198_s7  ;;  %v260_v5 = vld [vmem:[%s227_s11] sm:$0xff]  ;;  %v261_v6 = vld [vmem:[%s227_s11 + $0x8] sm:$0xff]  ;;  %v263_v7 = vld [vmem:[%s227_s11 + $0x18] sm:$0xff]  ;;  %vm300_vm1 = vcmask 97280  }
  0x4a   : > { %282 = vrot.lane.b32.xlu1 %v267_v2, %s1443_s29  ;;  %909 = vst [vmem:[%s1617_s17 + $0x38] sm:$0xf] %v267_v2  ;;  %270 = vrot.lane.b32.xlu0 %v264_v3, %s1443_s29  ;;  %906 = vst [vmem:[%s1617_s17 + $0x20] sm:$0xf] %v264_v3  ;;  %v298_v10 = vld [vmem:[#allocation5 + $0x10] sm:$0xff]  ;;  %v299_v11 = vld [vmem:[#allocation5 + $0x18] sm:$0xff] }
  0x4b   : > { %907 = vst [vmem:[%s1617_s17 + $0x28] sm:$0xf] %v265_v4  ;;  %902 = vst [vmem:[%s1617_s17] sm:$0xff] %v260_v5  ;;  %v266_v8 = vld [vmem:[%s227_s11 + $0x30] sm:$0xf]  ;;  %1164 = vmatprep.subr.msk.mxu0 %vm307_vm0, %v265_v4  ;;  %1168 = vmatprep.subr.msk.mxu1 %vm307_vm0, %v267_v2  ;;  %s1444_s12 = smov 127   ;;  %v855_v12 = vld [vmem:[%s1825_s2 + $0x8] sm:$0xff] }
  0x4c   : > { %903 = vst [vmem:[%s1617_s17 + $0x8] sm:$0xff] %v261_v6  ;;  %v262_v9 = vld [vmem:[%s227_s11 + $0x10] sm:$0xff]  ;;  %905 = vst [vmem:[%s1617_s17 + $0x18] sm:$0xff] %v263_v7  ;;  %1165 = vmatpush1.msk.msra.mxu0 %vm307_vm0, %v264_v3  ;;  %1169 = vmatpush1.msk.msra.mxu1 %vm307_vm0, %v266_v8  ;;  %v854_v13 = vld [vmem:[%s1825_s2] sm:$0xff]  ;;  %v1652_v15 = vand.u32 127, %v284_v14  ;;  %s1197_s23 = sshll.u32 %s1500_s22, 9 }
  0x4d   : > { %908 = vst [vmem:[%s1617_s17 + $0x30] sm:$0xf] %v266_v8  ;;  %904 = vst [vmem:[%s1617_s17 + $0x10] sm:$0xff] %v262_v9  ;;  %350 = vmatprep.subr.mxu0 %v261_v6  ;;  %427 = vmatprep.subr.mxu1 %v263_v7  ;;  %v295_v26 = vld [vmem:[#allocation5] sm:$0xff]  ;;  %v296_v30 = vld [vmem:[#allocation5 + $0x8] sm:$0xff]  ;;  %s1071_s8 = sshll.u32 %s1617_s17, 4  ;;  %s1779_s8 = int_to_ptr.vmem [resolvable:$true] %s1071_s8 }
  0x4e   : > { %274 = vrot.lane.b32.xlu0 %v265_v4, %s1443_s29  ;;  %268 = vrot.lane.b32.xlu1 %v260_v5, %s1443_s29  ;;  %vm286_vm2 = vcmp.lt.s32.totalorder %v1652_v15, 1  ;;  %vm662_vm3 = vcmp.lt.s32.totalorder %v1652_v15, 127  ;;  %v672_v38 = vld [vmem:[#allocation5 + $0x20] sm:$0xff]  ;;  %v673_v39 = vld [vmem:[#allocation5 + $0x28] sm:$0xff]  ;;  %vm910_vm4 = vcmp.lt.s32.totalorder %v1652_v15, 107  ;;  %s1058_s14 = scalar_lea.sflag [#allocation4], %s1601_s16 }
  0x4f   : > { %351 = vmatpush1.msra.mxu0 %v260_v5  ;;  %428 = vmatpush1.msra.mxu1 %v262_v9  ;;  %s1364_s25 = scalar_lea.vmem %s1779_s8, 1536  ;;  %p1844_p13 = scmp.ne.s32.totalorder %s1835_s30, 0 }
  0x50   : > { %1166 = vmatmul.mubr.msk.f32.vlgmr.msra.gmra.mxu0 %vm300_vm1, %v298_v10  ;;  %1170 = vmatmul.mubr.msk.f32.vlgmr.msra.gmra.mxu1 %vm300_vm1, %v298_v10  ;;  %p1365_p12 = scmp.ne.s32.totalorder %s1779_s8, %s1364_s25  ;;  %s1445_s22 = smov [#allocation7]  }
  0x51   : > { %390 = vmatprep.mubr.f32.mxu0 %v1442_v1  ;;  %467 = vmatprep.mubr.f32.mxu1 %v1442_v1  ;;  %s1368_s26 = sshll.u32 %s1445_s22, 4  ;;  %s1369_s26 = int_to_ptr.vmem [resolvable:$false] %s1368_s26 }
  0x52   : > { %272 = vrot.lane.b32.xlu0 %v261_v6, %s1443_s29  ;;  %280 = vrot.lane.b32.xlu1 %v263_v7, %s1443_s29  ;;  %p1366_p2 = pnand %p1365_p12, %p1844_p13  ;;  %s1370_s11 = scalar_lea.vmem %s1369_s26, 3072 }
  0x53   : > { %p1371_p7 = scmp.lt.s32.totalorder %s1779_s8, %s1369_s26  ;;  %p1372_p8 = scmp.lt.s32.totalorder %s1370_s11, %s1364_s25 }
  0x54   : > { %1167 = vmatmul.mubr.msk.f32.gmra.mxu0 %vm300_vm1, %v299_v11  ;;  %1171 = vmatmul.mubr.msk.f32.gmra.mxu1 %vm300_vm1, %v299_v11  ;;  %p1367_p3 = pneg %p1366_p2 }
  0x55   : > { %556 = vmatprep.mubr.f32.mxu0 %v1442_v1  ;;  %633 = vmatprep.mubr.f32.mxu1 %v1442_v1  ;;  %p1373_p9 = por %p1372_p8, %p1371_p7 }
  0x56   : > { %652 = vrot.lane.b32.xlu0 %v265_v4, %s1444_s12  ;;  %656 = vrot.lane.b32.xlu1 %v266_v8, %s1444_s12 }
  0x57   : > { %p1374_p10 = pnand %p1373_p9, %p1367_p3 }
  0x5a   : > { %648 = vrot.lane.b32.xlu0 %v264_v3, %s1444_s12  ;;  %650 = vrot.lane.b32.xlu1 %v261_v6, %s1444_s12 }
  0x5e   : > { %654 = vrot.lane.b32.xlu0 %v262_v9, %s1444_s12  ;;  %646 = vrot.lane.b32.xlu1 %v260_v5, %s1444_s12 }
  0x62   : > { %863 = vperm.xlu0 %1284, %v855_v12   ;;  %858 = vperm.xlu1 %1285, %v854_v13  }
  0x66   : > { %276 = vrot.lane.b32.xlu0 %v262_v9, %s1443_s29  ;;  %278 = vrot.lane.b32.xlu1 %v266_v8, %s1443_s29 }
  0x6a   : > { %658 = vrot.lane.b32.xlu0 %v263_v7, %s1444_s12  ;;  %660 = vrot.lane.b32.xlu1 %v267_v2, %s1444_s12 }
  0xbc   : > { %v283_v16 = vpop.permute.xlu1 %282  ;;  %v271_v17 = vpop.permute.xlu0 %270 }
  0xbd   : > { %v294_v21 = vsel %vm286_vm2, %v283_v16, %v271_v17 }
  0xc0   : > { %v275_v18 = vpop.permute.xlu0 %274  ;;  %v269_v19 = vpop.permute.xlu1 %268 }
  0xc1   : > { %v292_v20 = vsel %vm286_vm2, %v271_v17, %v275_v18 }
  0xc2   : > { %1172 = vmatprep.subr.msk.mxu0 %vm307_vm0, %v292_v20 }
  0xc3   : > { %1173 = vmatpush1.msk.msra.mxu0 %vm307_vm0, %v294_v21 }
  0xc4   : > { %v273_v22 = vpop.permute.xlu0 %272  ;;  %v281_v23 = vpop.permute.xlu1 %280 }
  0xc5   : > { %v293_v24 = vsel %vm286_vm2, %v281_v23, %v269_v19  ;;  %v291_v25 = vsel %vm286_vm2, %v269_v19, %v273_v22 }
  0xc6   : > { %522 = vmatprep.subr.mxu0 %v291_v25 }
  0xc7   : > { %523 = vmatpush1.msra.mxu0 %v293_v24 }
  0xc8   : > { %v653_v27 = vpop.permute.xlu0 %652  ;;  %v657_v28 = vpop.permute.xlu1 %656  ;;  %1174 = vmatmul.mubr.msk.f32.vlgmr.msra.gmra.mxu0 %vm300_vm1, %v295_v26 }
  0xc9   : > { %v666_v29 = vsel %vm662_vm3, %v653_v27, %v657_v28  ;;  %562 = vmatprep.mubr.f32.mxu0 %v1442_v1 }
  0xca   : > { %1180 = vmatprep.subr.msk.mxu0 %vm307_vm0, %v666_v29 }
  0xcc   : > { %v649_v31 = vpop.permute.xlu0 %648  ;;  %v651_v32 = vpop.permute.xlu1 %650  ;;  %1175 = vmatmul.mubr.msk.f32.gmra.mxu0 %vm300_vm1, %v296_v30 }
  0xcd   : > { %v668_v33 = vsel %vm662_vm3, %v649_v31, %v653_v27  ;;  %756 = vmatprep.mubr.f32.mxu0 %v1442_v1 }
  0xce   : > { %1181 = vmatpush1.msk.msra.mxu0 %vm307_vm0, %v668_v33 }
  0xd0   : > { %v655_v34 = vpop.permute.xlu0 %654  ;;  %v647_v35 = vpop.permute.xlu1 %646 }
  0xd1   : > { %v667_v36 = vsel %vm662_vm3, %v647_v35, %v651_v32  ;;  %v665_v37 = vsel %vm662_vm3, %v651_v32, %v655_v34 }
  0xd2   : > { %722 = vmatprep.subr.mxu0 %v665_v37 }
  0xd3   : > { %723 = vmatpush1.msra.mxu0 %v667_v36 }
  0xd4   : > { %1182 = vmatmul.mubr.msk.f32.vlgmr.msra.gmra.mxu0 %vm300_vm1, %v672_v38 }
  0xd5   : > { %762 = vmatprep.mubr.f32.mxu0 %v1442_v1 }
  0xd8   : > { %1183 = vmatmul.mubr.msk.f32.gmra.mxu0 %vm300_vm1, %v673_v39 }
  0xdd   : > { %v1683_v40 = vpop.permute.xlu0 %863  ;;  %v1685_v41 = vpop.permute.xlu1 %858 }
  0xe1   : > { %v277_v42 = vpop.permute.xlu0 %276  ;;  %v279_v43 = vpop.permute.xlu1 %278 }
  0xe2   : > { %v288_v44 = vsel %vm286_vm2, %v279_v43, %v283_v16  ;;  %v290_v45 = vsel %vm286_vm2, %v275_v18, %v279_v43  ;;  %v287_v46 = vsel %vm286_vm2, %v277_v42, %v281_v23  ;;  %v289_v47 = vsel %vm286_vm2, %v273_v22, %v277_v42 }
  0xe3   : > { %1176 = vmatprep.subr.msk.mxu1 %vm307_vm0, %v288_v44 }
  0xe4   : > { %1177 = vmatpush1.msk.msra.mxu1 %vm307_vm0, %v290_v45 }
  0xe5   : > { %v659_v48 = vpop.permute.xlu0 %658  ;;  %599 = vmatprep.subr.mxu1 %v287_v46  ;;  %v661_v49 = vpop.permute.xlu1 %660 }
  0xe6   : > { %v664_v50 = vsel %vm662_vm3, %v657_v28, %v661_v49  ;;  %v670_v51 = vsel %vm662_vm3, %v661_v49, %v649_v31  ;;  %600 = vmatpush1.msra.mxu1 %v289_v47  ;;  %v669_v52 = vsel %vm662_vm3, %v659_v48, %v647_v35  ;;  %v663_v53 = vsel %vm662_vm3, %v655_v34, %v659_v48 }
  0xe7   : > { %1178 = vmatmul.mubr.msk.f32.vlgmr.msra.gmra.mxu1 %vm300_vm1, %v295_v26  ;;  %1184 = vmatprep.subr.msk.mxu1 %vm307_vm0, %v670_v51 }
  0xe8   : > { %1185 = vmatpush1.msk.msra.mxu1 %vm307_vm0, %v664_v50  ;;  %639 = vmatprep.mubr.f32.mxu1 %v1442_v1 }
  0xe9   : > { %799 = vmatprep.subr.mxu1 %v669_v52 }
  0xea   : > { %800 = vmatpush1.msra.mxu1 %v663_v53 }
  0xeb   : > { %1179 = vmatmul.mubr.msk.f32.gmra.mxu1 %vm300_vm1, %v296_v30 }
  0xec   : > { %833 = vmatprep.mubr.f32.mxu1 %v1442_v1 }
  0xef   : > { %1186 = vmatmul.mubr.msk.f32.vlgmr.msra.gmra.mxu1 %vm300_vm1, %v672_v38 }
  0xf0   : > { %839 = vmatprep.mubr.f32.mxu1 %v1442_v1 }
  0xf3   : > { %1187 = vmatmul.mubr.msk.f32.gmra.mxu1 %vm300_vm1, %v673_v39 }
 0x110   : > { %v386_v54 = vpop.f32.mrf.mxu0  ;;  %v463_v26 = vpop.f32.mrf.mxu1 }
 0x112   : > { %v388_v55 = vpop.f32.mrf.mxu0  ;;  %v465_v27 = vpop.f32.mrf.mxu1 }
 0x114   : > { %v392_v56 = vpop.f32.mrf.mxu0  ;;  %v469_v28 = vpop.f32.mrf.mxu1 }
 0x116   : > { %v394_v57 = vpop.f32.mrf.mxu0  ;;  %v471_v29 = vpop.f32.mrf.mxu1 }
 0x188   : > { %v558_v58 = vpop.f32.mrf.mxu0 }
 0x189   : > { %v559_v17 = vadd.f32 %v558_v58, %v386_v54 }
 0x18a   : > { %v560_v59 = vpop.f32.mrf.mxu0 }
 0x18b   : > { %v561_v0 = vadd.f32 %v560_v59, %v388_v55 }
 0x18c   : > { %v564_v60 = vpop.f32.mrf.mxu0 }
 0x18d   : > { %v565_v3 = vadd.f32 %v564_v60, %v392_v56 }
 0x18e   : > { %v566_v61 = vpop.f32.mrf.mxu0 }
 0x18f   : > { %v567_v62 = vadd.f32 %v566_v61, %v394_v57 }
 0x194   : > { %v758_v63 = vpop.f32.mrf.mxu0 }
 0x195   : > { %v846_v18 = vadd.f32 %v758_v63, %v559_v17 }
 0x196   : > { %v760_v2 = vpop.f32.mrf.mxu0 }
 0x197   : > { %v847_v4 = vadd.f32 %v760_v2, %v561_v0  ;;  %v866_v19 = vadd.f32 %v1685_v41, %v846_v18 }
 0x198   : > { %v764_v5 = vpop.f32.mrf.mxu0 }
 0x199   : > { %v850_v6 = vadd.f32 %v764_v5, %v565_v3  ;;  %v867_v21 = vadd.f32 %v1685_v41, %v847_v4 }
 0x19a   : > { %v766_v7 = vpop.f32.mrf.mxu0 }
 0x19b   : > { %v870_v1 = vadd.f32 %v1683_v40, %v850_v6  ;;  %v851_v8 = vadd.f32 %v766_v7, %v567_v62 }
 0x19d   : > { %v1188_v9 = vmul.f32 -1.442695, %v870_v1  ;;  %v871_v10 = vadd.f32 %v1683_v40, %v851_v8 }
 0x19f   : > { %1286 = vpow2.f32 %v1188_v9  ;;  %v1189_v11 = vmul.f32 -1.442695, %v871_v10 }
 0x1a1   : > { %1288 = vpow2.f32 %v1189_v11 }
 0x1a7   : > { %v635_v30 = vpop.f32.mrf.mxu1 }
 0x1a8   : > { %v636_v60 = vadd.f32 %v635_v30, %v463_v26 }
 0x1a9   : > { %v637_v33 = vpop.f32.mrf.mxu1 }
 0x1aa   : > { %v638_v63 = vadd.f32 %v637_v33, %v465_v27 }
 0x1ab   : > { %v641_v36 = vpop.f32.mrf.mxu1 }
 0x1ac   : > { %v1287_v12 = vpop.eup %1286  ;;  %v642_v45 = vadd.f32 %v641_v36, %v469_v28  ;;  %v1748_v36 = vld [vmem:[%s1826_s3] sm:$0xff] }
 0x1ad   : > { %v886_v13 = vadd.f32 1.0, %v1287_v12  ;;  %v643_v39 = vpop.f32.mrf.mxu1 }
 0x1ae   : > { %v1289_v14 = vpop.eup %1288  ;;  %v644_v47 = vadd.f32 %v643_v39, %v471_v29 }
 0x1af   : > { %1290 = vrcp.f32 %v886_v13  ;;  %v887_v16 = vadd.f32 1.0, %v1289_v14  ;;  %v835_v43 = vpop.f32.mrf.mxu1 }
 0x1b0   : > { %v848_v0 = vadd.f32 %v835_v43, %v636_v60 }
 0x1b1   : > { %1292 = vrcp.f32 %v887_v16  ;;  %v837_v44 = vpop.f32.mrf.mxu1 }
 0x1b2   : > { %v868_v4 = vadd.f32 %v1685_v41, %v848_v0  ;;  %v849_v5 = vadd.f32 %v837_v44, %v638_v63 }
 0x1b3   : > { %v841_v46 = vpop.f32.mrf.mxu1 }
 0x1b4   : > { %v852_v48 = vadd.f32 %v841_v46, %v642_v45  ;;  %v869_v8 = vadd.f32 %v1685_v41, %v849_v5 }
 0x1b5   : > { %v843_v49 = vpop.f32.mrf.mxu1 }
 0x1b6   : > { %v872_v50 = vadd.f32 %v1683_v40, %v852_v48  ;;  %v853_v51 = vadd.f32 %v843_v49, %v644_v47 }
 0x1b8   : > { %v1190_v52 = vmul.f32 -1.442695, %v872_v50  ;;  %v873_v53 = vadd.f32 %v1683_v40, %v853_v51 }
 0x1ba   : > { %1294 = vpow2.f32 %v1190_v52  ;;  %v1191_v54 = vmul.f32 -1.442695, %v873_v53 }
 0x1bc   : > { %v1291_v20 = vpop.eup %1290  ;;  %1296 = vpow2.f32 %v1191_v54 }
 0x1bd   : > { %v898_v22 = vmul.f32 %v1291_v20, %v866_v19 }
 0x1be   : > { %v1293_v23 = vpop.eup %1292 }
 0x1bf   : > { %v913_v24 = vsel %vm910_vm4, %v898_v22, 0.0  ;;  %v1721_v25 = vmul.f32 %v1293_v23, %v867_v21 }
 0x1c0   : > { %914 = vadd.xlane.f32.xlu1 %v913_v24 }
 0x1c1   : > { %v949_v6 = vsel %vm910_vm4, %v1721_v25, 0.0 }
 0x1c7   : > { %v1295_v55 = vpop.eup %1294 }
 0x1c8   : > { %v888_v56 = vadd.f32 1.0, %v1295_v55 }
 0x1c9   : > { %v1297_v57 = vpop.eup %1296 }
 0x1ca   : > { %1298 = vrcp.f32 %v888_v56  ;;  %v889_v58 = vadd.f32 1.0, %v1297_v57 }
 0x1cc   : > { %1300 = vrcp.f32 %v889_v58 }
 0x1d7   : > { %v1299_v3 = vpop.eup %1298 }
 0x1d8   : > { %v1731_v7 = vmul.f32 %v1299_v3, %v868_v4 }
 0x1d9   : > { %v1301_v1 = vpop.eup %1300 }
 0x1da   : > { %v985_v9 = vsel %vm910_vm4, %v1731_v7, 0.0  ;;  %v1737_v10 = vmul.f32 %v1301_v1, %v869_v8 }
 0x1dc   : > { %v1021_v11 = vsel %vm910_vm4, %v1737_v10, 0.0 }
 0x249   : > { %v915_v31 = vpop.xlane.xlu1 %914 }
 0x24a   : > { %v916_v32 = vrot.slane %v915_v31, 4 }
 0x24c   : > { %v917_v34 = vadd.f32 %v916_v32, %v915_v31 }
 0x24e   : > { %v918_v35 = vrot.slane %v917_v34, 2 }
 0x250   : > { %v919_v37 = vadd.f32 %v918_v35, %v917_v34 }
 0x252   : > { %v920_v38 = vrot.slane %v919_v37, 1 }
 0x254   : > { %v921_v42 = vadd.f32 %v920_v38, %v919_v37  ;;  %v1753_v38 = vld [vmem:[%s1827_s4] sm:$0xff] }
 0x256   : > { %1199 = vpush %v921_v42 }
 0x287   : > { %s1200_s10 = spop %1199 }
 0x288   : > { %v923_v59 = vstv %s1200_s10 }
 0x289   : > { %v924_v61 = vmul.f32 0.0011682243, %v923_v59 }
 0x28b   : > { %v925_v62 = vsub.f32 %v898_v22, %v924_v61 }
 0x28d   : > { %v926_v2 = vsel %vm910_vm4, %v925_v62, 0.0 }
 0x28e   : > { %v927_v40 = vmul.f32 %v926_v2, %v926_v2 }
 0x290   : > { %928 = vadd.xlane.f32.xlu0 %v927_v40 }
 0x294   : > { %950 = vadd.xlane.f32.xlu0 %v949_v6 }
 0x298   : > { %986 = vadd.xlane.f32.xlu0 %v985_v9 }
 0x29c   : > { %1022 = vadd.xlane.f32.xlu0 %v1021_v11 }
 0x319   : > { %v929_v12 = vpop.xlane.xlu0 %928 }
 0x31a   : > { %v930_v13 = vrot.slane %v929_v12, 4 }
 0x31c   : > { %v931_v14 = vadd.f32 %v930_v13, %v929_v12 }
 0x31d   : > { %v951_v16 = vpop.xlane.xlu0 %950 }
 0x31e   : > { %v932_v17 = vrot.slane %v931_v14, 2  ;;  %v952_v18 = vrot.slane %v951_v16, 4 }
 0x320   : > { %v953_v19 = vadd.f32 %v952_v18, %v951_v16  ;;  %v933_v41 = vadd.f32 %v932_v17, %v931_v14 }
 0x321   : > { %v987_v43 = vpop.xlane.xlu0 %986 }
 0x322   : > { %v954_v20 = vrot.slane %v953_v19, 2  ;;  %v934_v21 = vrot.slane %v933_v41, 1  ;;  %v988_v44 = vrot.slane %v987_v43, 4 }
 0x324   : > { %v935_v22 = vadd.f32 %v934_v21, %v933_v41  ;;  %v955_v23 = vadd.f32 %v954_v20, %v953_v19  ;;  %v989_v45 = vadd.f32 %v988_v44, %v987_v43 }
 0x325   : > { %v1023_v6 = vpop.xlane.xlu0 %1022 }
 0x326   : > { %1201 = vpush %v935_v22  ;;  %v956_v24 = vrot.slane %v955_v23, 1  ;;  %v990_v46 = vrot.slane %v989_v45, 2  ;;  %v1024_v1 = vrot.slane %v1023_v6, 4 }
 0x328   : > { %v957_v26 = vadd.f32 %v956_v24, %v955_v23  ;;  %v991_v50 = vadd.f32 %v990_v46, %v989_v45  ;;  %v1025_v8 = vadd.f32 %v1024_v1, %v1023_v6 }
 0x32a   : > { %1203 = vpush %v957_v26  ;;  %v992_v53 = vrot.slane %v991_v50, 1  ;;  %v1026_v9 = vrot.slane %v1025_v8, 2 }
 0x32c   : > { %v993_v56 = vadd.f32 %v992_v53, %v991_v50  ;;  %v1027_v13 = vadd.f32 %v1026_v9, %v1025_v8 }
 0x32e   : > { %v1028_v17 = vrot.slane %v1027_v13, 1 }
 0x330   : > { %v1029_v41 = vadd.f32 %v1028_v17, %v1027_v13 }
 0x357   : > { %s1202_s9 = spop %1201 }
 0x358   : > { %v937_v27 = vstv %s1202_s9 }
 0x359   : > { %v938_v28 = vmul.f32 0.0011682243, %v937_v27 }
 0x35b   : > { %v939_v29 = vadd.f32 1e-05, %v938_v28  ;;  %s1204_s13 = spop %1203 }
 0x35c   : > { %v959_v30 = vstv %s1204_s13  ;;  %s1777_s13 = scalar_lea.hbm %s1828_s5, %s1197_s23 }
 0x35d   : > { %1302 = vrsqrt.f32 %v939_v29  ;;  %v960_v31 = vmul.f32 0.0011682243, %v959_v30 }
 0x35f   : > { %v961_v32 = vsub.f32 %v1721_v25, %v960_v31 }
 0x361   : > { %v962_v33 = vsel %vm910_vm4, %v961_v32, 0.0 }
 0x362   : > { %v963_v34 = vmul.f32 %v962_v33, %v962_v33 }
 0x364   : > { %964 = vadd.xlane.f32.xlu1 %v963_v34 }
 0x36a   : > { %v1303_v35 = vpop.eup %1302 }
 0x36b   : > { %v941_v37 = vmul.f32 %v1303_v35, %v925_v62 }
 0x36d   : > { %v942_v39 = vmul.f32 %v941_v37, %v1748_v36 }
 0x36f   : > { %v943_v25 = vadd.f32 %v942_v39, %v1753_v38 }
 0x371   : > { %v945_v42 = vrot.slane %v943_v25, 4 }
 0x373   : > { %947 = vst [vmem:[%s1617_s17 + $0x40] ss:$-28 sps:$4 sm:$0xff] %v945_v42  }
 0x3ed   : > { %v965_v47 = vpop.xlane.xlu1 %964 }
 0x3ee   : > { %v966_v48 = vrot.slane %v965_v47, 4 }
 0x3f0   : > { %v967_v49 = vadd.f32 %v966_v48, %v965_v47 }
 0x3f2   : > { %v968_v51 = vrot.slane %v967_v49, 2 }
 0x3f4   : > { %v969_v52 = vadd.f32 %v968_v51, %v967_v49 }
 0x3f6   : > { %v970_v54 = vrot.slane %v969_v52, 1 }
 0x3f8   : > { %v971_v55 = vadd.f32 %v970_v54, %v969_v52 }
 0x3fa   : > { %1205 = vpush %v971_v55 }
 0x3fb   : > { %1207 = vpush %v993_v56 }
 0x42b   : > { %s1206_s7 = spop %1205 }
 0x42c   : > { %v973_v57 = vstv %s1206_s7  ;;  %s1208_s29 = spop %1207 }
 0x42d   : > { %v974_v58 = vmul.f32 0.0011682243, %v973_v57  ;;  %v995_v59 = vstv %s1208_s29 }
 0x42e   : > { %v996_v60 = vmul.f32 0.0011682243, %v995_v59 }
 0x42f   : > { %v975_v61 = vadd.f32 1e-05, %v974_v58 }
 0x430   : > { %v997_v62 = vsub.f32 %v1731_v7, %v996_v60 }
 0x431   : > { %1304 = vrsqrt.f32 %v975_v61 }
 0x432   : > { %v998_v63 = vsel %vm910_vm4, %v997_v62, 0.0 }
 0x433   : > { %v999_v0 = vmul.f32 %v998_v63, %v998_v63 }
 0x435   : > { %1000 = vadd.xlane.f32.xlu1 %v999_v0 }
 0x43e   : > { %v1305_v2 = vpop.eup %1304 }
 0x43f   : > { %v977_v40 = vmul.f32 %v1305_v2, %v961_v32 }
 0x441   : > { %v978_v3 = vmul.f32 %v977_v40, %v1748_v36 }
 0x443   : > { %v979_v4 = vadd.f32 %v978_v3, %v1753_v38 }
 0x445   : > { %v981_v5 = vrot.slane %v979_v4, 4 }
 0x447   : > { %983 = vst [vmem:[%s1617_s17 + $0x48] ss:$-28 sps:$4 sm:$0xff] %v981_v5  }
 0x4be   : > { %v1001_v11 = vpop.xlane.xlu1 %1000 }
 0x4bf   : > { %v1002_v7 = vrot.slane %v1001_v11, 4 }
 0x4c1   : > { %v1003_v12 = vadd.f32 %v1002_v7, %v1001_v11 }
 0x4c3   : > { %v1004_v14 = vrot.slane %v1003_v12, 2 }
 0x4c5   : > { %v1005_v16 = vadd.f32 %v1004_v14, %v1003_v12 }
 0x4c7   : > { %v1006_v18 = vrot.slane %v1005_v16, 1 }
 0x4c9   : > { %v1007_v19 = vadd.f32 %v1006_v18, %v1005_v16 }
 0x4cb   : > { %1209 = vpush %v1007_v19 }
 0x4cc   : > { %1211 = vpush %v1029_v41 }
 0x4fc   : > { %s1210_s12 = spop %1209 }
 0x4fd   : > { %v1009_v20 = vstv %s1210_s12  ;;  %s1212_s15 = spop %1211 }
 0x4fe   : > { %v1010_v21 = vmul.f32 0.0011682243, %v1009_v20  ;;  %v1031_v22 = vstv %s1212_s15 }
 0x4ff   : > { %v1032_v23 = vmul.f32 0.0011682243, %v1031_v22 }
 0x500   : > { %v1011_v24 = vadd.f32 1e-05, %v1010_v21 }
 0x501   : > { %v1033_v26 = vsub.f32 %v1737_v10, %v1032_v23 }
 0x502   : > { %1306 = vrsqrt.f32 %v1011_v24 }
 0x503   : > { %v1034_v27 = vsel %vm910_vm4, %v1033_v26, 0.0 }
 0x504   : > { %v1035_v28 = vmul.f32 %v1034_v27, %v1034_v27 }
 0x506   : > { %1036 = vadd.xlane.f32.xlu1 %v1035_v28 }
 0x50f   : > { %v1307_v29 = vpop.eup %1306 }
 0x510   : > { %v1013_v30 = vmul.f32 %v1307_v29, %v997_v62 }
 0x512   : > { %v1014_v31 = vmul.f32 %v1013_v30, %v1748_v36 }
 0x514   : > { %v1015_v32 = vadd.f32 %v1014_v31, %v1753_v38 }
 0x516   : > { %v1017_v33 = vrot.slane %v1015_v32, 4 }
 0x518   : > { %1019 = vst [vmem:[%s1617_s17 + $0x50] ss:$-28 sps:$4 sm:$0xff] %v1017_v33  }
 0x58f   : > { %v1037_v34 = vpop.xlane.xlu1 %1036 }
 0x590   : > { %v1038_v35 = vrot.slane %v1037_v34, 4 }
 0x592   : > { %v1039_v37 = vadd.f32 %v1038_v35, %v1037_v34 }
 0x594   : > { %v1040_v10 = vrot.slane %v1039_v37, 2 }
 0x596   : > { %v1041_v39 = vadd.f32 %v1040_v10, %v1039_v37 }
 0x598   : > { %v1042_v25 = vrot.slane %v1041_v39, 1 }
 0x59a   : > { %v1043_v15 = vadd.f32 %v1042_v25, %v1041_v39 }
 0x59c   : > { %1213 = vpush %v1043_v15 }
 0x5cd   : > { %s1214_s28 = spop %1213 }
 0x5ce   : > { %v1045_v42 = vstv %s1214_s28 }
 0x5cf   : > { %v1046_v43 = vmul.f32 0.0011682243, %v1045_v42 }
 0x5d1   : > { %v1047_v44 = vadd.f32 1e-05, %v1046_v43 }
 0x5d3   : > { %1308 = vrsqrt.f32 %v1047_v44 }
 0x5e0   : > { %v1309_v45 = vpop.eup %1308 }
 0x5e1   : > { %v1049_v46 = vmul.f32 %v1309_v45, %v1033_v26 }
 0x5e3   : > { %v1050_v47 = vmul.f32 %v1049_v46, %v1748_v36 }
 0x5e5   : > { %v1051_v48 = vadd.f32 %v1050_v47, %v1753_v38 }
 0x5e7   : > { %v1053_v49 = vrot.slane %v1051_v48, 4 }
 0x5e9   : > { %1055 = vst [vmem:[%s1617_s17 + $0x58] ss:$-28 sps:$4 sm:$0xff] %v1053_v49  }
 0x5ea   : > { %1377 = shalt.err (!%p1374_p10)
}
 0x5eb   : > { %s1378_s17 = scalar_lea.hbm %s1777_s13, 1536  ;;  %s1382_s12 = scalar_lea.hbm %s1828_s5, 3072 }
 0x5ec   : > { %p1379_p5 = scmp.ne.s32.totalorder %s1777_s13, %s1378_s17  ;;  %p1383_p4 = scmp.lt.s32.totalorder %s1777_s13, %s1828_s5 }
 0x5ed   : > { %p1384_p0 = scmp.lt.s32.totalorder %s1382_s12, %s1378_s17 }
 0x5ee   : > { %p1380_p11 = pnand %p1379_p5, %p1844_p13 }
 0x5ef   : > { %p1385_p1 = por %p1384_p0, %p1383_p4 }
 0x5f0   : > { %p1381_p6 = pneg %p1380_p11 }
 0x5f2   : > { %p1386_p12 = pnand %p1385_p1, %p1381_p6 }
 0x5f4   : > { %1389 = shalt.err (!%p1386_p12)
}
 0x5f5   : > { %s1446_s23 = smov 512   ;;  %s1447_s10 = smov 1024  }
 0x5f6   : > { %s1448_s9 = smov 32  }
 0x5f7   : > { %1221 = dma.vmem_to_hbm [thread:$0]  (%p1844_p13), %s1779_s8, 1536, %s1777_s13, %s1058_s14, %s1446_s23, %s1447_s10, %s1448_s9  }
 0x5f8 PF: > { %s1086_s25 = sand.u32 1, %s1420_s18   ;;  %p1845_p2 = scmp.ne.s32.totalorder %s1836_s6, 0 }
 0x5f9   : > { %p1846_p3 = scmp.ge.s32.totalorder %s1432_s21, 2  ;;  %s1087_s22 = scalar_lea.sflag [#allocation4], %s1086_s25 }
 0x5fb   : > { %p1232_p7 = pnand %p1846_p3, %p1845_p2 }
 0x5fd   : > { %p1233_p8 = pneg %p1232_p7 }
 0x5ff   : > { %1415 = dma.done.wait (%p1233_p8), %s1087_s22, 1536  }
 0x600   : > { %1417 = vsyncadd (%p1233_p8), %s1087_s22, 4294965760  ;;  %p19_p9 = scmp.ge.s32.totalorder %s1504_s24, 4   ;;  %s1847_s18 = smov %s1424_s19 }
 0x601   : > { %s1848_s19 = smov %s1428_s20  ;;  %s1849_s20 = smov %s1516_s27 }
 0x602   : > { %s1850_s21 = smov %s1504_s24  ;;  %21 = sbr.rel (!%p19_p9) target bundleno = 6 (0x6), region = 91 }
 0x607   :  { %1092 = vsyncpa [#allocation3], 1 }
 0x608   :  { %1094 = vsyncpa [#allocation3 + $0x1], 1 }
 0x609   :  { %1095 = vsyncpa [#allocation6], 1 }
 0x60a   :  { %1096 = vsyncpa [#allocation4], 1 }
 0x60b   :  { %1098 = vsyncpa [#allocation4 + $0x1], 1 }

</bundles_post_ra>
